<compile_context>
chip_gen: v7x
topology: tpu7x:2x2x1
jax: 0.10.0
libtpu: 0.0.40
codegen_flags: <defaults>
</compile_context>

<pallas_src>
import math
import functools

import jax
import jax.numpy as jnp
from jax import lax
from jax.experimental import pallas as pl
from jax.experimental.pallas import tpu as pltpu


# ----------------------------------------------------------------------------
# helpers
# ----------------------------------------------------------------------------
def _round_up(v, m):
    return ((v + m - 1) // m) * m


def _cdiv(a, b):
    return (a + b - 1) // b


def _device_caps():
    """Per-generation VMEM budget + tile caps.

    v5e/v6e have 128 MiB VMEM per TensorCore, v7x only 64 MiB, so the
    double-buffered working-set budget and the K-tile cap differ.
    """
    try:
        vmem_cap = int(pltpu.get_tpu_info().vmem_capacity_bytes)
    except Exception:
        vmem_cap = 64 * 1024 * 1024            # conservative (v7x) fallback
    if vmem_cap >= 96 * 1024 * 1024:           # v5e / v6e (128 MiB)
        budget = 48 * 1024 * 1024
        cap_n, cap_co, cap_k = 1024, 1024, 1024
    else:                                      # v7x (64 MiB physical per TC)
        budget = 26 * 1024 * 1024
        cap_n, cap_co, cap_k = 1024, 1024, 512
    return cap_n, cap_co, cap_k, budget, vmem_cap


# ----------------------------------------------------------------------------
# kernel
# ----------------------------------------------------------------------------
def _linear_kernel(x_ref, w_ref, b_ref, o_ref, acc_ref):
    # x_ref:   (tile_n,  tile_k)   VMEM   rows of x
    # w_ref:   (tile_k,  tile_co)  VMEM   weight pre-transposed to [C_in, C_out]
    # b_ref:   (1,       tile_co)  VMEM   bias (f32)
    # o_ref:   (tile_n,  tile_co)  VMEM
    # acc_ref: (tile_n,  tile_co)  VMEM   f32 scratch, persists across K steps
    k = pl.program_id(2)

    @pl.when(k == 0)
    def _():
        # Fold the bias into the accumulator init (saves an epilogue VPU add).
        acc_ref[...] = jnp.broadcast_to(b_ref[...].astype(jnp.float32),
                                        acc_ref.shape)

    # RHS is already [K, C_out]: contraction dim on sublanes, C_out on lanes,
    # so the MXU is fed natively (no per-step relayout through the XLU).
    acc_ref[...] += jnp.dot(x_ref[...], w_ref[...],
                            preferred_element_type=jnp.float32)

    @pl.when(k == pl.num_programs(2) - 1)
    def _():
        o_ref[...] = acc_ref[...].astype(o_ref.dtype)


# ----------------------------------------------------------------------------
# one-time parameter prep (hoisted out of the per-call path)
# ----------------------------------------------------------------------------
def prepare_params(weight, bias=None):
    """Transpose the static weight to [C_in, C_out] and zero-pad weight/bias
    to tile-aligned shapes.  Run once per parameter set, NOT per forward call.

    weight: [C_out, C_in]  (native PyTorch layout)
    bias:   [C_out] or None
    Returns (w_t, b2): w_t [k_pad, co_pad], b2 [1, co_pad] float32.
    """
    c_out, c_in = weight.shape
    _, cap_co, cap_k, _, _ = _device_caps()

    k_pad = _round_up(c_in, 128)
    if k_pad > cap_k:
        k_pad = _round_up(c_in, cap_k)
    co_pad = _round_up(c_out, 128)
    if co_pad > cap_co:
        co_pad = _round_up(c_out, cap_co)

    w_t = jnp.pad(jnp.transpose(weight),
                  ((0, k_pad - c_in), (0, co_pad - c_out)))
    if bias is None:
        b = jnp.zeros((c_out,), jnp.float32)
    else:
        b = bias.astype(jnp.float32)           # keep bias add in f32
    b2 = jnp.pad(b.reshape(1, c_out), ((0, 0), (0, co_pad - c_out)))
    return w_t, b2


# ----------------------------------------------------------------------------
# forward
# ----------------------------------------------------------------------------
@functools.partial(jax.jit, static_argnums=(3,))
def max3_linear_forward(x, w_t, b2, c_out):
    """y = x @ W^T + b   (F.linear semantics).

    x:    [..., C_in]
    w_t:  [k_pad, co_pad]  from prepare_params (transposed + padded weight)
    b2:   [1, co_pad]      from prepare_params (f32 padded bias)
    c_out: original number of output channels (static)
    """
    orig_shape = x.shape
    c_in = orig_shape[-1]
    k_pad, co_pad = w_t.shape

    x2 = x.reshape(-1, c_in)
    n = x2.shape[0]

    # Pad K only (garbage in a ragged K tail would corrupt every output);
    # rows stay unpadded -- partial trailing row blocks are masked on store.
    if k_pad != c_in:
        x2 = jnp.pad(x2, ((0, 0), (0, k_pad - c_in)))

    cap_n, cap_co, cap_k, budget, vmem_cap = _device_caps()
    itemsize = jnp.dtype(x.dtype).itemsize
    sublane = 8 if itemsize >= 4 else 16

    tile_k = min(cap_k, k_pad)
    assert k_pad % tile_k == 0, "weight must be padded via prepare_params"
    tile_co = min(cap_co, co_pad)

    if n <= cap_n:
        # Full-dim row block when possible (allowed even if not 8-aligned);
        # otherwise largest 8-aligned block with a ragged trailing block.
        tile_n = n if (n < sublane or n % sublane == 0) else (n // sublane) * sublane
    else:
        tile_n = cap_n

    def vmem_bytes(tn, tco):
        # double-buffered x, W, out  +  bias  +  f32 accumulator scratch
        return ((2 * tn * tile_k + 2 * tile_k * tco + 2 * tn * tco) * itemsize
                + 2 * tco * 4 + tn * tco * 4)

    while tile_n > sublane and vmem_bytes(tile_n, tile_co) > budget:
        tile_n = max(sublane, _round_up(tile_n // 2, sublane))

    # v7x megacore: guarantee >= 2 "parallel" blocks when the problem would
    # otherwise fit a single (i, j) block.
    if _cdiv(n, tile_n) * _cdiv(co_pad, tile_co) < 2 and co_pad >= 256:
        tile_co = _round_up(co_pad // 2, 128)

    grid = (_cdiv(n, tile_n), _cdiv(co_pad, tile_co), k_pad // tile_k)
    gi, gj, gk = grid

    vmem_needed = vmem_bytes(tile_n, tile_co)
    vmem_limit = min(int(vmem_cap * 0.85),
                     max(32 * 1024 * 1024, vmem_needed + 8 * 1024 * 1024))

    cost = pl.CostEstimate(
        flops=2 * n * k_pad * co_pad,
        transcendentals=0,
        bytes_accessed=int(gj * n * k_pad * itemsize        # x re-streamed per j
                           + gi * k_pad * co_pad * itemsize  # W re-streamed per i
                           + gi * co_pad * 4                 # bias
                           + n * co_pad * itemsize),         # output (written once)
    )

    out = pl.pallas_call(
        _linear_kernel,
        out_shape=jax.ShapeDtypeStruct((n, co_pad), x.dtype),
        grid_spec=pltpu.PrefetchScalarGridSpec(
            num_scalar_prefetch=0,
            grid=grid,
            in_specs=[
                pl.BlockSpec((tile_n, tile_k), lambda i, j, k: (i, k)),    # x
                pl.BlockSpec((tile_k, tile_co), lambda i, j, k: (k, j)),   # W^T
                pl.BlockSpec((1, tile_co), lambda i, j, k: (0, j)),        # bias
            ],
            out_specs=pl.BlockSpec((tile_n, tile_co), lambda i, j, k: (i, j)),
            scratch_shapes=[pltpu.VMEM((tile_n, tile_co), jnp.float32)],
        ),
        compiler_params=pltpu.CompilerParams(
            dimension_semantics=("parallel", "parallel", "arbitrary"),
            vmem_limit_bytes=int(vmem_limit),
        ),
        cost_estimate=cost,
    )(x2, w_t, b2)

    out = out[:, :c_out]
    return out.reshape(orig_shape[:-1] + (c_out,))


# ----------------------------------------------------------------------------
# deterministic init mirroring the module's defaults
# ----------------------------------------------------------------------------
def init_params(key, in_channels, out_channels):
    """weight: kaiming_uniform(fan=in_channels, a=sqrt(5))
       bias:   U(-1/sqrt(fan), 1/sqrt(fan))"""
    kw, kb = jax.random.split(key)
    a = math.sqrt(5.0)
    w_bound = math.sqrt(6.0 / ((1.0 + a * a) * in_channels))
    weight = jax.random.uniform(
        kw, (out_channels, in_channels), jnp.float32, -w_bound, w_bound)
    b_bound = 1.0 / math.sqrt(in_channels)
    bias = jax.random.uniform(
        kb, (out_channels,), jnp.float32, -b_bound, b_bound)
    return weight, bias


if __name__ == "__main__":
    key = jax.random.PRNGKey(0)
    k1, k2, k3, k4, k5, k6 = jax.random.split(key, 6)

    # Case 1: tiny graph-node shape (N x C_in), single block.
    N1, Ci1, Co1 = 8, 32, 64
    x1 = jax.random.normal(k1, (N1, Ci1), jnp.float32)
    w1, b1 = init_params(k2, Ci1, Co1)
    w1_t, b1_p = prepare_params(w1, b1)
    y1 = jax.block_until_ready(max3_linear_forward(x1, w1_t, b1_p, Co1))
    y1_ref = jnp.dot(x1, w1.T, precision=lax.Precision.HIGHEST) + b1
    assert y1.shape == (N1, Co1)
    assert jnp.allclose(y1, y1_ref, atol=1e-4, rtol=1e-4), "mismatch (case 1)"

    # Case 2: non-aligned rows / channels (K + C_out padding, no N pad).
    N2, Ci2, Co2 = 200, 48, 96
    x2 = jax.random.normal(k3, (N2, Ci2), jnp.float32)
    w2, b2 = init_params(k4, Ci2, Co2)
    w2_t, b2_p = prepare_params(w2, b2)
    y2 = jax.block_until_ready(max3_linear_forward(x2, w2_t, b2_p, Co2))
    y2_ref = jnp.dot(x2, w2.T, precision=lax.Precision.HIGHEST) + b2
    assert y2.shape == (N2, Co2)
    assert jnp.allclose(y2, y2_ref, atol=1e-4, rtol=1e-4), "mismatch (case 2)"

    # Case 3: multi-step K reduction + megacore j-split (still small / fast).
    N3, Ci3, Co3 = 128, 1536, 256
    x3 = jax.random.normal(k5, (N3, Ci3), jnp.float32)
    w3, b3 = init_params(k6, Ci3, Co3)
    w3_t, b3_p = prepare_params(w3, b3)
    y3 = jax.block_until_ready(max3_linear_forward(x3, w3_t, b3_p, Co3))
    y3_ref = jnp.dot(x3, w3.T, precision=lax.Precision.HIGHEST) + b3
    assert y3.shape == (N3, Co3)
    assert jnp.allclose(y3, y3_ref, atol=3e-3, rtol=3e-3), "mismatch (case 3)"

    print("KERNEL_OK")
</pallas_src>

<mosaic_0001>
module attributes {stable_mosaic.version = 11 : i64} {
  func.func @_linear_kernel(%arg0: i32, %arg1: i32, %arg2: i32, %arg3: memref<8x128xf32, #tpu.memory_space<vmem>>, %arg4: memref<128x128xf32, #tpu.memory_space<vmem>>, %arg5: memref<1x128xf32, #tpu.memory_space<vmem>>, %arg6: memref<8x128xf32, #tpu.memory_space<vmem>>, %arg7: memref<8x128xf32, #tpu.memory_space<vmem>>) attributes {dimension_semantics = [#tpu.dimension_semantics<parallel>, #tpu.dimension_semantics<parallel>, #tpu.dimension_semantics<arbitrary>], iteration_bounds = array<i64: 1, 1, 1>, scalar_prefetch = 0 : i64, scratch_operands = 1 : i64, tpu.core_type = #tpu.core_type<tc>, window_params = [{transform_indices = @transform_0, window_bounds = array<i64: 8, 128>}, {transform_indices = @transform_1, window_bounds = array<i64: 128, 128>}, {transform_indices = @transform_2, window_bounds = array<i64: 1, 128>}, {transform_indices = @transform_3, window_bounds = array<i64: 8, 128>}]} {
    %c0_i32 = arith.constant 0 : i32
    %0 = arith.cmpi eq, %arg2, %c0_i32 : i32
    %1 = arith.extui %0 : i1 to i32
    %c0_i32_0 = arith.constant 0 : i32
    %2 = arith.cmpi ne, %1, %c0_i32_0 : i32
    scf.if %2 {
      %c0_10 = arith.constant 0 : index
      %c0_11 = arith.constant 0 : index
      %12 = vector.load %arg5[%c0_10, %c0_11] : memref<1x128xf32, #tpu.memory_space<vmem>>, vector<1x128xf32>
      %13 = vector.shape_cast %12 : vector<1x128xf32> to vector<1x128xf32>
      %14 = vector.broadcast %13 : vector<1x128xf32> to vector<8x128xf32>
      %c0_12 = arith.constant 0 : index
      %c0_13 = arith.constant 0 : index
      %15 = vector.load %arg7[%c0_12, %c0_13] : memref<8x128xf32, #tpu.memory_space<vmem>>, vector<8x128xf32>
      tpu.vector_store %arg7[%c0_12, %c0_13], %14 {strides = array<i32>} : memref<8x128xf32, #tpu.memory_space<vmem>>, vector<8x128xf32>,
    } else {
    }
    %c0 = arith.constant 0 : index
    %c0_1 = arith.constant 0 : index
    %3 = vector.load %arg7[%c0, %c0_1] : memref<8x128xf32, #tpu.memory_space<vmem>>, vector<8x128xf32>
    %c0_2 = arith.constant 0 : index
    %c0_3 = arith.constant 0 : index
    %4 = vector.load %arg3[%c0_2, %c0_3] : memref<8x128xf32, #tpu.memory_space<vmem>>, vector<8x128xf32>
    %c0_4 = arith.constant 0 : index
    %c0_5 = arith.constant 0 : index
    %5 = vector.load %arg4[%c0_4, %c0_5] : memref<128x128xf32, #tpu.memory_space<vmem>>, vector<128x128xf32>
    %cst = arith.constant dense<0.000000e+00> : vector<8x128xf32>
    %6 = tpu.matmul %4, %5, %cst {dimension_numbers = #tpu.dot_dimension_numbers<[1], [0], [0], [1], [0, 0, 1, 1], [], []>} : vector<8x128xf32>, vector<128x128xf32>, vector<8x128xf32> -> vector<8x128xf32>
    %7 = arith.addf %3, %6 : vector<8x128xf32>
    %c0_6 = arith.constant 0 : index
    %c0_7 = arith.constant 0 : index
    %8 = vector.load %arg7[%c0_6, %c0_7] : memref<8x128xf32, #tpu.memory_space<vmem>>, vector<8x128xf32>
    tpu.vector_store %arg7[%c0_6, %c0_7], %7 {strides = array<i32>} : memref<8x128xf32, #tpu.memory_space<vmem>>, vector<8x128xf32>,
    %c0_i32_8 = arith.constant 0 : i32
    %9 = arith.cmpi eq, %arg2, %c0_i32_8 : i32
    %10 = arith.extui %9 : i1 to i32
    %c0_i32_9 = arith.constant 0 : i32
    %11 = arith.cmpi ne, %10, %c0_i32_9 : i32
    scf.if %11 {
      %c0_10 = arith.constant 0 : index
      %c0_11 = arith.constant 0 : index
      %12 = vector.load %arg7[%c0_10, %c0_11] : memref<8x128xf32, #tpu.memory_space<vmem>>, vector<8x128xf32>
      %c0_12 = arith.constant 0 : index
      %c0_13 = arith.constant 0 : index
      %13 = vector.load %arg6[%c0_12, %c0_13] : memref<8x128xf32, #tpu.memory_space<vmem>>, vector<8x128xf32>
      tpu.vector_store %arg6[%c0_12, %c0_13], %12 {strides = array<i32>} : memref<8x128xf32, #tpu.memory_space<vmem>>, vector<8x128xf32>,
    } else {
    }
    return
  }
  func.func @transform_0(%arg0: i32, %arg1: i32, %arg2: i32) -> (i32, i32) {
    %c0_i32 = arith.constant 0 : i32
    return %arg0, %arg2 : i32, i32
  }
  func.func @transform_1(%arg0: i32, %arg1: i32, %arg2: i32) -> (i32, i32) {
    %c0_i32 = arith.constant 0 : i32
    return %arg2, %arg1 : i32, i32
  }
  func.func @transform_2(%arg0: i32, %arg1: i32, %arg2: i32) -> (i32, i32) {
    %c0_i32 = arith.constant 0 : i32
    %c0_i32_0 = arith.constant 0 : i32
    return %c0_i32, %arg1 : i32, i32
  }
  func.func @transform_3(%arg0: i32, %arg1: i32, %arg2: i32) -> (i32, i32) {
    %c0_i32 = arith.constant 0 : i32
    return %arg0, %arg1 : i32, i32
  }
}

</mosaic_0001>

<bundles_post_ra>
// kernel: max3_linear_forward.1
= control target key start
LH: loop header
LB: loop body
LE: loop exit
PB: predicated region body
PF: predicated region fallthrough
CT: control target
= control target key end

     0   :  { %8 = vsyncpa [#allocation4], 0  ;;  %s340_s0 = inlined_call_operand.vmem [shape: f32[8,128], index: 0, kind: input, shape index: {}]   ;;  %s341_s1 = inlined_call_operand.hbm [shape: f32[128,128], index: 1, kind: input, shape index: {}]   ;;  %s342_s2 = inlined_call_operand.vmem [shape: f32[1,128], index: 2, kind: input, shape index: {}]   ;;  %s343_s3 = inlined_call_operand.hbm [shape: f32[8,128], index: 3, kind: output, shape index: {}]  }
   0x1   :  { %9 = vsyncpa [#allocation5], 0  ;;  %s283_s12 = smov [#allocation3]   ;;  %s235_s16 = scalar_lea.hbm %s341_s1, 2048 }
   0x2   :  { %s17_s13 = sshll.u32 %s283_s12, 4  ;;  %p236_p0 = scmp.ne.s32.totalorder %s341_s1, %s235_s16  ;;  %s18_s13 = int_to_ptr.vmem [resolvable:$true] %s17_s13 }
   0x3   :  { %p239_p1 = scmp.lt.u32.totalorder %s235_s16, %s341_s1 }
   0x5   :  { %p241_p2 = pnand %p239_p1, %p236_p0 }
   0x7   :  { %244 = shalt.err (!%p241_p2)
}
   0x8   :  { %s245_s21 = scalar_lea.vmem %s18_s13, 2048  ;;  %p250_p4 = scmp.lt.s32.totalorder %s18_s13, %s18_s13 }
   0x9   :  { %p246_p3 = scmp.ne.s32.totalorder %s18_s13, %s245_s21  ;;  %p251_p5 = scmp.lt.s32.totalorder %s245_s21, %s245_s21 }
   0xb   :  { %p252_p6 = por %p251_p5, %p250_p4 }
   0xd   :  { %p253_p7 = pnand %p252_p6, %p246_p3 }
   0xf   :  { %256 = shalt.err (!%p253_p7)
}
  0x10   :  { %s284_s22 = smov 128   ;;  %s285_s23 = smov 8  }
  0x11   :  { %23 = dma.hbm_to_vmem [thread:$0]  %s341_s1, 2048, %s18_s13, [#allocation4], %s284_s22, %s284_s22, %s285_s23  }
  0x12   :  { %279 = dma.done.wait [#allocation4], 2048  }
  0x13   :  { %280 = vsyncadd [#allocation4], 4294965248  ;;  %v286_v0 = vmov 0.0|0.0   ;;  %vm287_vm0 = vmmov 0   ;;  %v288_v1 = vmov 0.0   ;;  %v43_v2 = vld [vmem:[#allocation3] sm:$0xff] }
  0x14   :  { %204 = vmatprep.subr.bf16.mxu0 %v286_v0  ;;  %201 = vmatprep.mubr.msk.f32.mxu0 %vm287_vm0, %v288_v1  ;;  %v44_v3 = vld [vmem:[#allocation3 + $0x8] sm:$0xff]  ;;  %v45_v4 = vld [vmem:[#allocation3 + $0x10] sm:$0xff]  ;;  %v46_v6 = vld [vmem:[#allocation3 + $0x18] sm:$0xff]  ;;  %s289_s29 = smov [#allocation6]  }
  0x15   :  { %v205_v5 = vpack.c.bf16 %v44_v3, %v43_v2  ;;  %v208_v7 = vpack.c.bf16 %v46_v6, %v45_v4  ;;  %v47_v8 = vld [vmem:[#allocation3 + $0x20] sm:$0xff]  ;;  %v48_v9 = vld [vmem:[#allocation3 + $0x28] sm:$0xff]  ;;  %v49_v11 = vld [vmem:[#allocation3 + $0x30] sm:$0xff]  ;;  %s142_s30 = sshll.u32 %s289_s29, 4  ;;  %s143_s30 = int_to_ptr.vmem [resolvable:$true] %s142_s30 }
  0x16   :  { %v211_v10 = vpack.c.bf16 %v48_v9, %v47_v8  ;;  %v50_v12 = vld [vmem:[#allocation3 + $0x38] sm:$0xff]  ;;  %v51_v14 = vld [vmem:[#allocation3 + $0x40] sm:$0xff]  ;;  %v52_v15 = vld [vmem:[#allocation3 + $0x48] sm:$0xff]  ;;  %s257_s4 = scalar_lea.vmem %s143_s30, 128  ;;  %p262_p9 = scmp.lt.s32.totalorder %s143_s30, %s143_s30 }
  0x17   :  { %206 = vmatpush3.bf16.msra.mxu0 %v205_v5  ;;  %v214_v13 = vpack.c.bf16 %v50_v12, %v49_v11  ;;  %v217_v16 = vpack.c.bf16 %v52_v15, %v51_v14  ;;  %v53_v17 = vld [vmem:[#allocation3 + $0x50] sm:$0xff]  ;;  %v54_v18 = vld [vmem:[#allocation3 + $0x58] sm:$0xff]  ;;  %v55_v20 = vld [vmem:[#allocation3 + $0x60] sm:$0xff]  ;;  %p258_p8 = scmp.ne.s32.totalorder %s143_s30, %s257_s4  ;;  %p263_p10 = scmp.lt.s32.totalorder %s257_s4, %s257_s4 }
  0x18   :  { %207 = vmatprep.subr.bf16.mxu0 %v286_v0  ;;  %v220_v19 = vpack.c.bf16 %v54_v18, %v53_v17  ;;  %v56_v21 = vld [vmem:[#allocation3 + $0x68] sm:$0xff]  ;;  %v57_v23 = vld [vmem:[#allocation3 + $0x70] sm:$0xff]  ;;  %v58_v24 = vld [vmem:[#allocation3 + $0x78] sm:$0xff] }
  0x19   :  { %v223_v22 = vpack.c.bf16 %v56_v21, %v55_v20  ;;  %v226_v25 = vpack.c.bf16 %v58_v24, %v57_v23  ;;  %v42_v26 = vld [vmem:[%s340_s0] sm:$0xff]  ;;  %p264_p11 = por %p263_p10, %p262_p9 }
  0x1a   :  { %v151_v27 = vld [vmem:[%s342_s2] ss:$0 sm:$0xff] }
  0x1b   :  { %209 = vmatpush3.bf16.msra.mxu0 %v208_v7  ;;  %p265_p12 = pnand %p264_p11, %p258_p8 }
  0x1c   :  { %210 = vmatprep.subr.bf16.mxu0 %v286_v0 }
  0x1f   :  { %212 = vmatpush3.bf16.msra.mxu0 %v211_v10 }
  0x20   :  { %213 = vmatprep.subr.bf16.mxu0 %v286_v0 }
  0x23   :  { %215 = vmatpush3.bf16.msra.mxu0 %v214_v13 }
  0x24   :  { %216 = vmatprep.subr.bf16.mxu0 %v286_v0 }
  0x27   :  { %218 = vmatpush3.bf16.msra.mxu0 %v217_v16 }
  0x28   :  { %219 = vmatprep.subr.bf16.mxu0 %v286_v0 }
  0x2b   :  { %221 = vmatpush3.bf16.msra.mxu0 %v220_v19 }
  0x2c   :  { %222 = vmatprep.subr.bf16.mxu0 %v286_v0 }
  0x2f   :  { %224 = vmatpush3.bf16.msra.mxu0 %v223_v22 }
  0x30   :  { %225 = vmatprep.subr.bf16.mxu0 %v286_v0 }
  0x33   :  { %227 = vmatpush3.bf16.msra.mxu0 %v226_v25 }
  0x36   :  { %202 = vmatmul.mubr.f32.vlgmr.msra.gmra.mrb[0].mxu0 %v42_v26 }
 0x109   :  { %v125_v28 = vpop.f32.mrb[0].mxu0 }
 0x10a   :  { %v129_v29 = vadd.f32 %v151_v27, %v125_v28  ;;  %v203_v30 = vpop.f32.mrb[1].mxu0 }
 0x10c   :  { %135 = vst [vmem:[#allocation6] sm:$0xff] %v129_v29 }
 0x10d   :  { %268 = shalt.err (!%p265_p12)
}
 0x10e   :  { %s269_s6 = scalar_lea.hbm %s343_s3, 128 }
 0x10f   :  { %p270_p13 = scmp.ne.s32.totalorder %s343_s3, %s269_s6  ;;  %p273_p0 = scmp.lt.u32.totalorder %s269_s6, %s343_s3 }
 0x111   :  { %p275_p1 = pnand %p273_p0, %p270_p13 }
 0x113   :  { %278 = shalt.err (!%p275_p1)
}
 0x114   :  { %145 = dma.vmem_to_hbm [thread:$0]  %s143_s30, 128, %s343_s3, [#allocation5]  }
 0x115   :  { %281 = dma.done.wait [#allocation5], 128  }
 0x116   :  { %282 = vsyncadd [#allocation5], 4294967168 }
 0x117   :  { %149 = vsyncpa [#allocation4], 1 }
 0x118   :  { %150 = vsyncpa [#allocation5], 1 }

</bundles_post_ra>
